<compile_context>
chip_gen: v7x
topology: tpu7x:2x2x1
jax: 0.10.0
libtpu: 0.0.40
codegen_flags: <defaults>
</compile_context>

<pallas_src>
import jax
import jax.numpy as jnp
from jax.experimental import pallas as pl
from jax.experimental.pallas import tpu as pltpu


def dec_kernel(x_ref, w1_ref, b1_ref, w2_ref, b2_ref, o_ref):
    # Hidden layer: (tb, d_x) @ (d_x, d_hid) on the MXU, f32 accumulation.
    h = jnp.dot(x_ref[...], w1_ref[...], preferred_element_type=jnp.float32)
    h = jnp.tanh(h + b1_ref[...])                     # bias add (VPU) + tanh (EUP)
    # Output layer: (tb, d_hid) @ (d_hid, d_y), f32 accumulation.
    y = jnp.dot(h, w2_ref[...], preferred_element_type=jnp.float32)
    o_ref[...] = jax.nn.sigmoid(y + b2_ref[...])      # bias add + sigmoid (EUP)


def _batch_tile(B, block_b):
    """Pick the rows-per-grid-step tile.

    * Big batches: cap at block_b (large tiles amortize per-step overhead).
    * Medium batches: split into (at least) 2 tiles so a "parallel" grid axis
      gives both v7x TensorCores work; tile kept a multiple of 8 (sublane).
    * Tiny batches (<= 8): single tile equal to the full dim (always legal).
    """
    if B <= 8:
        return B
    half = (B + 1) // 2
    tb = ((half + 7) // 8) * 8
    return max(8, min(tb, block_b))


def dec_forward(x, w1, b1, w2, b2, *, block_b=2048):
    """y = sigmoid(tanh(x @ w1 + b1) @ w2 + b2).

    x: (B, d_x); w1: (d_x, d_hid); b1: (1, d_hid); w2: (d_hid, d_y); b2: (1, d_y).
    Weights are stored (in, out), i.e. transposed vs. torch's (out, in) layout.
    """
    B, d_x = x.shape
    d_hid = w1.shape[1]
    d_y = w2.shape[1]

    x = x.astype(jnp.float32)
    w1 = w1.astype(jnp.float32)
    b1 = b1.astype(jnp.float32)
    w2 = w2.astype(jnp.float32)
    b2 = b2.astype(jnp.float32)

    tb = _batch_tile(B, block_b)
    grid = (pl.cdiv(B, tb),)   # ragged last block: reads padded, writes masked

    # Honest post-fix traffic: one f32 pass over x, one over the unpadded
    # output, weights/biases DMA'd once.
    cost = pl.CostEstimate(
        flops=2 * B * (d_x * d_hid + d_hid * d_y),
        transcendentals=B * (d_hid + d_y),
        bytes_accessed=(x.size + w1.size + b1.size + w2.size + b2.size
                        + B * d_y) * 4,
    )

    return pl.pallas_call(
        dec_kernel,
        out_shape=jax.ShapeDtypeStruct((B, d_y), jnp.float32),
        grid=grid,
        in_specs=[
            pl.BlockSpec((tb, d_x), lambda i: (i, 0)),      # x: streamed per tile
            pl.BlockSpec((d_x, d_hid), lambda i: (0, 0)),   # w1: VMEM-resident
            pl.BlockSpec((1, d_hid), lambda i: (0, 0)),     # b1: VMEM-resident
            pl.BlockSpec((d_hid, d_y), lambda i: (0, 0)),   # w2: VMEM-resident
            pl.BlockSpec((1, d_y), lambda i: (0, 0)),       # b2: VMEM-resident
        ],
        out_specs=pl.BlockSpec((tb, d_y), lambda i: (i, 0)),
        compiler_params=pltpu.CompilerParams(
            dimension_semantics=("parallel",),   # v7x: batch split across 2 TCs
            vmem_limit_bytes=32 * 1024 * 1024,   # ample; tiles are << 1 MiB each
        ),
        cost_estimate=cost,
    )(x, w1, b1, w2, b2)


def init_dec_params(key, d_x, d_hid, d_y):
    """Deterministic init mirroring nn.Linear defaults (U(-1/sqrt(fan_in), +)),
    stored as (in, out) — transpose of torch's (out, in) layout."""
    k1, k2, k3, k4 = jax.random.split(key, 4)
    lim1 = 1.0 / jnp.sqrt(d_x)
    lim2 = 1.0 / jnp.sqrt(d_hid)
    w1 = jax.random.uniform(k1, (d_x, d_hid), jnp.float32, -lim1, lim1)
    b1 = jax.random.uniform(k2, (1, d_hid), jnp.float32, -lim1, lim1)
    w2 = jax.random.uniform(k3, (d_hid, d_y), jnp.float32, -lim2, lim2)
    b2 = jax.random.uniform(k4, (1, d_y), jnp.float32, -lim2, lim2)
    return w1, b1, w2, b2


if __name__ == "__main__":
    key = jax.random.PRNGKey(0)
    kx, kp = jax.random.split(key)

    # Batch large enough to exercise a 2-tile "parallel" grid.
    B, d_x, d_hid, d_y = 512, 32, 64, 16
    x = jax.random.normal(kx, (B, d_x), jnp.float32)
    w1, b1, w2, b2 = init_dec_params(kp, d_x, d_hid, d_y)

    out = dec_forward(x, w1, b1, w2, b2)
    jax.block_until_ready(out)

    # Plain-JAX f32 reference (kernel is full f32 now -> tight tolerance).
    ref = jax.nn.sigmoid(jnp.tanh(x @ w1 + b1) @ w2 + b2)
    assert out.shape == (B, d_y), out.shape
    assert jnp.allclose(out, ref, atol=1e-4, rtol=1e-4), float(
        jnp.max(jnp.abs(out - ref)))

    # Odd batch size: exercises the ragged last block (no wrapper pad copy).
    out_small = dec_forward(x[:37], w1, b1, w2, b2)
    jax.block_until_ready(out_small)
    assert out_small.shape == (37, d_y)
    assert jnp.allclose(out_small, ref[:37], atol=1e-4, rtol=1e-4)

    print("KERNEL_OK")
</pallas_src>

<mosaic_0001>
module attributes {stable_mosaic.version = 11 : i64} {
  func.func @dec_kernel(%arg0: i32, %arg1: memref<256x32xf32, #tpu.memory_space<vmem>>, %arg2: memref<32x64xf32, #tpu.memory_space<vmem>>, %arg3: memref<1x64xf32, #tpu.memory_space<vmem>>, %arg4: memref<64x16xf32, #tpu.memory_space<vmem>>, %arg5: memref<1x16xf32, #tpu.memory_space<vmem>>, %arg6: memref<256x16xf32, #tpu.memory_space<vmem>>) attributes {dimension_semantics = [#tpu.dimension_semantics<parallel>], iteration_bounds = array<i64: 2>, scalar_prefetch = 0 : i64, scratch_operands = 0 : i64, tpu.core_type = #tpu.core_type<tc>, window_params = [{transform_indices = @transform_0, window_bounds = array<i64: 256, 32>}, {pipeline_mode = #tpu.pipeline_mode<synchronous>, transform_indices = @transform_1, window_bounds = array<i64: 32, 64>}, {pipeline_mode = #tpu.pipeline_mode<synchronous>, transform_indices = @transform_2, window_bounds = array<i64: 1, 64>}, {pipeline_mode = #tpu.pipeline_mode<synchronous>, transform_indices = @transform_3, window_bounds = array<i64: 64, 16>}, {pipeline_mode = #tpu.pipeline_mode<synchronous>, transform_indices = @transform_4, window_bounds = array<i64: 1, 16>}, {transform_indices = @transform_5, window_bounds = array<i64: 256, 16>}]} {
    %c0 = arith.constant 0 : index
    %c0_0 = arith.constant 0 : index
    %0 = vector.load %arg1[%c0, %c0_0] : memref<256x32xf32, #tpu.memory_space<vmem>>, vector<256x32xf32>
    %c0_1 = arith.constant 0 : index
    %c0_2 = arith.constant 0 : index
    %1 = vector.load %arg2[%c0_1, %c0_2] : memref<32x64xf32, #tpu.memory_space<vmem>>, vector<32x64xf32>
    %cst = arith.constant dense<0.000000e+00> : vector<256x64xf32>
    %2 = tpu.matmul %0, %1, %cst {dimension_numbers = #tpu.dot_dimension_numbers<[1], [0], [0], [1], [0, 0, 1, 1], [], []>} : vector<256x32xf32>, vector<32x64xf32>, vector<256x64xf32> -> vector<256x64xf32>
    %c0_3 = arith.constant 0 : index
    %c0_4 = arith.constant 0 : index
    %3 = vector.load %arg3[%c0_3, %c0_4] : memref<1x64xf32, #tpu.memory_space<vmem>>, vector<1x64xf32>
    %4 = vector.broadcast %3 : vector<1x64xf32> to vector<256x64xf32>
    %5 = arith.addf %2, %4 : vector<256x64xf32>
    %6 = math.tanh %5 : vector<256x64xf32>
    %c0_5 = arith.constant 0 : index
    %c0_6 = arith.constant 0 : index
    %7 = vector.load %arg4[%c0_5, %c0_6] : memref<64x16xf32, #tpu.memory_space<vmem>>, vector<64x16xf32>
    %cst_7 = arith.constant dense<0.000000e+00> : vector<256x16xf32>
    %8 = tpu.matmul %6, %7, %cst_7 {dimension_numbers = #tpu.dot_dimension_numbers<[1], [0], [0], [1], [0, 0, 1, 1], [], []>} : vector<256x64xf32>, vector<64x16xf32>, vector<256x16xf32> -> vector<256x16xf32>
    %c0_8 = arith.constant 0 : index
    %c0_9 = arith.constant 0 : index
    %9 = vector.load %arg5[%c0_8, %c0_9] : memref<1x16xf32, #tpu.memory_space<vmem>>, vector<1x16xf32>
    %10 = vector.broadcast %9 : vector<1x16xf32> to vector<256x16xf32>
    %11 = arith.addf %8, %10 : vector<256x16xf32>
    %12 = arith.negf %11 : vector<256x16xf32>
    %13 = math.exp %12 : vector<256x16xf32>
    %cst_10 = arith.constant 1.000000e+00 : f32
    %14 = vector.broadcast %cst_10 : f32 to vector<256x16xf32>
    %15 = arith.addf %14, %13 : vector<256x16xf32>
    %16 = arith.divf %14, %15 : vector<256x16xf32>
    %c0_11 = arith.constant 0 : index
    %c0_12 = arith.constant 0 : index
    %17 = vector.load %arg6[%c0_11, %c0_12] : memref<256x16xf32, #tpu.memory_space<vmem>>, vector<256x16xf32>
    tpu.vector_store %arg6[%c0_11, %c0_12], %16 {strides = array<i32>} : memref<256x16xf32, #tpu.memory_space<vmem>>, vector<256x16xf32>,
    return
  }
  func.func @transform_0(%arg0: i32) -> (i32, i32) {
    %c0_i32 = arith.constant 0 : i32
    %c0_i32_0 = arith.constant 0 : i32
    return %arg0, %c0_i32 : i32, i32
  }
  func.func @transform_1(%arg0: i32) -> (i32, i32) {
    %c0_i32 = arith.constant 0 : i32
    %c0_i32_0 = arith.constant 0 : i32
    %c0_i32_1 = arith.constant 0 : i32
    return %c0_i32, %c0_i32_0 : i32, i32
  }
  func.func @transform_2(%arg0: i32) -> (i32, i32) {
    %c0_i32 = arith.constant 0 : i32
    %c0_i32_0 = arith.constant 0 : i32
    %c0_i32_1 = arith.constant 0 : i32
    return %c0_i32, %c0_i32_0 : i32, i32
  }
  func.func @transform_3(%arg0: i32) -> (i32, i32) {
    %c0_i32 = arith.constant 0 : i32
    %c0_i32_0 = arith.constant 0 : i32
    %c0_i32_1 = arith.constant 0 : i32
    return %c0_i32, %c0_i32_0 : i32, i32
  }
  func.func @transform_4(%arg0: i32) -> (i32, i32) {
    %c0_i32 = arith.constant 0 : i32
    %c0_i32_0 = arith.constant 0 : i32
    %c0_i32_1 = arith.constant 0 : i32
    return %c0_i32, %c0_i32_0 : i32, i32
  }
  func.func @transform_5(%arg0: i32) -> (i32, i32) {
    %c0_i32 = arith.constant 0 : i32
    %c0_i32_0 = arith.constant 0 : i32
    return %arg0, %c0_i32 : i32, i32
  }
}

</mosaic_0001>

<bundles_post_ra>
// kernel: tpu_custom_call.1
= control target key start
LH: loop header
LB: loop body
LE: loop exit
PB: predicated region body
PF: predicated region fallthrough
CT: control target
= control target key end

     0   :  { %s1818_s18 = smov 0   ;;  %s2116_s0 = inlined_call_operand.vmem [shape: f32[512,32], index: 0, kind: input, shape index: {}]   ;;  %s2117_s1 = inlined_call_operand.vmem [shape: f32[32,64], index: 1, kind: input, shape index: {}]   ;;  %s2118_s2 = inlined_call_operand.vmem [shape: f32[1,64], index: 2, kind: input, shape index: {}]   ;;  %s2119_s3 = inlined_call_operand.vmem [shape: f32[64,16], index: 3, kind: input, shape index: {}]   ;;  %s2120_s4 = inlined_call_operand.vmem [shape: f32[1,16], index: 4, kind: input, shape index: {}]   ;;  %s2121_s5 = inlined_call_operand.vmem [shape: f32[512,16], index: 5, kind: output, shape index: {}]  }
   0x1 LB: > { %s1243_s19 = sadd.s32 4294967295, %s1786_s18   ;;  %p1247_p0 = scmp.ge.s32.totalorder %s1786_s18, 1  ;;  %s1786_s18 = sphi %s1818_s18, %s15_s18  }
   0x2   : > { %p188_p1 = scmp.lt.s32.totalorder %s1786_s18, 3 }
   0x4   : > { %p189_p2 = pnand %p1247_p0, %p188_p1 }
   0x5   : > { %v260_v0 = vld [vmem:[%s2117_s1] sm:$0xff] (!%p189_p2)  ;;  %v261_v1 = vld [vmem:[%s2117_s1 + $0x8] sm:$0xff] (!%p189_p2)  ;;  %v262_v2 = vld [vmem:[%s2117_s1 + $0x10] sm:$0xff] (!%p189_p2)  ;;  %s1248_s26 = sshll.u32 (!%p189_p2), %s1243_s19, 5  ;;  %vm271_vm0 = vcmask (!%p189_p2), 261120   ;;  %vm640_vm1 = vcmask (!%p189_p2), 523264  }
   0x6   : > { %192 = sbr.rel (%p189_p2) target bundleno = 550 (0x226), region = 40  ;;  %v1548_v3 = vpack.c.bf16 (!%p189_p2), %v261_v1, %v260_v0  ;;  %v263_v4 = vld [vmem:[%s2117_s1 + $0x18] sm:$0xff] (!%p189_p2)  ;;  %p217_p3 = scmp.lt.s32.totalorder (!%p189_p2), %s1248_s26, 63  ;;  %v625_v38 = vld [vmem:[%s2119_s3] sm:$0xff] (!%p189_p2)  ;;  %v626_v39 = vld [vmem:[%s2119_s3 + $0x8] sm:$0xff] (!%p189_p2)  ;;  %vm1154_vm2 = vcmask (!%p189_p2), 130048  }
   0x7   : > { %v1552_v5 = vpack.c.bf16 (!%p189_p2), %v263_v4, %v262_v2  ;;  %v1556_v40 = vpack.c.bf16 (!%p189_p2), %v626_v39, %v625_v38  ;;  %v627_v41 = vld [vmem:[%s2119_s3 + $0x10] sm:$0xff] (!%p189_p2)  ;;  %v628_v42 = vld [vmem:[%s2119_s3 + $0x18] sm:$0xff] (!%p189_p2)  ;;  %v629_v44 = vld [vmem:[%s2119_s3 + $0x20] sm:$0xff] (!%p189_p2) }
   0x8   : > { %1549 = vmatprep.subr.bf16.mxu0 (!%p189_p2), %v1548_v3  ;;  %v1560_v43 = vpack.c.bf16 (!%p189_p2), %v628_v42, %v627_v41  ;;  %v630_v45 = vld [vmem:[%s2119_s3 + $0x28] sm:$0xff] (!%p189_p2)  ;;  %v631_v47 = vld [vmem:[%s2119_s3 + $0x30] sm:$0xff] (!%p189_p2)  ;;  %v632_v48 = vld [vmem:[%s2119_s3 + $0x38] sm:$0xff] (!%p189_p2) }
   0x9   : > { %1551 = vmatpush3.bf16.msra.mxu0 (!%p189_p2), %v1548_v3  ;;  %1572 = vmatprep.subr.bf16.mxu1 (!%p189_p2), %v1556_v40  ;;  %v1564_v46 = vpack.c.bf16 (!%p189_p2), %v630_v45, %v629_v44  ;;  %v1568_v49 = vpack.c.bf16 (!%p189_p2), %v632_v48, %v631_v47  ;;  %v1939_v50 = vld [vmem:[%s2118_s2] ss:$0 sm:$0xff] (!%p189_p2) }
   0xa   : > { %1553 = vmatprep.subr.bf16.mxu0 (!%p189_p2), %v1552_v5  ;;  %1576 = vmatpush3.bf16.msra.mxu1 (!%p189_p2), %v1556_v40 }
   0xb   : > { %1573 = vmatprep.subr.bf16.mxu1 (!%p189_p2), %v1560_v43 }
   0xd   : > { %s2123_s26 = smov (!%p217_p3, %s1248_s26), 63  ;;  %1555 = vmatpush3.bf16.msra.mxu0 %v1552_v5 }
   0xe   : > { %s1249_s29 = sshll.u32 %s2123_s26, 3  ;;  %1557 = vmatprep.subr.bf16.mxu0 %v1556_v40  ;;  %1577 = vmatpush3.bf16.msra.mxu1 %v1560_v43 }
   0xf   : > { %s1846_s7 = scalar_lea.vmem %s2116_s0, %s1249_s29  ;;  %1574 = vmatprep.subr.bf16.mxu1 %v1564_v46  ;;  %s2028_s8 = scalar_lea.vmem %s2121_s5, %s1249_s29 }
  0x10   : > { %v228_v6 = vld [vmem:[%s1846_s7] sm:$0xff]  ;;  %v229_v7 = vld [vmem:[%s1846_s7 + $0x8] sm:$0xff]  ;;  %v230_v8 = vld [vmem:[%s1846_s7 + $0x10] sm:$0xff] }
  0x11   : > { %1436 = vmatprep.mubr.msk.f32.mxu0 %vm271_vm0, %v228_v6  ;;  %v231_v9 = vld [vmem:[%s1846_s7 + $0x18] sm:$0xff]  ;;  %v232_v10 = vld [vmem:[%s1846_s7 + $0x20] sm:$0xff]  ;;  %v233_v11 = vld [vmem:[%s1846_s7 + $0x28] sm:$0xff] }
  0x12   : > { %1437 = vmatmul.mubr.msk.f32.vlgmr.msra.gmra.mrb[0].mxu0 %vm271_vm0, %v229_v7  ;;  %v234_v12 = vld [vmem:[%s1846_s7 + $0x30] sm:$0xff]  ;;  %v235_v13 = vld [vmem:[%s1846_s7 + $0x38] sm:$0xff]  ;;  %v236_v14 = vld [vmem:[%s1846_s7 + $0x40] sm:$0xff]  ;;  %1578 = vmatpush3.bf16.msra.mxu1 %v1564_v46 }
  0x13   : > { %1439 = vmatprep.mubr.msk.f32.mxu0 %vm271_vm0, %v230_v8  ;;  %v237_v15 = vld [vmem:[%s1846_s7 + $0x48] sm:$0xff]  ;;  %v238_v16 = vld [vmem:[%s1846_s7 + $0x50] sm:$0xff]  ;;  %v239_v17 = vld [vmem:[%s1846_s7 + $0x58] sm:$0xff]  ;;  %1559 = vmatpush3.bf16.msra.mxu0 %v1556_v40 }
  0x14   : > { %v240_v18 = vld [vmem:[%s1846_s7 + $0x60] sm:$0xff]  ;;  %v241_v19 = vld [vmem:[%s1846_s7 + $0x68] sm:$0xff]  ;;  %v242_v20 = vld [vmem:[%s1846_s7 + $0x70] sm:$0xff]  ;;  %1561 = vmatprep.subr.bf16.mxu0 %v1560_v43  ;;  %1575 = vmatprep.subr.bf16.mxu1 %v1568_v49 }
  0x15   : > { %v243_v21 = vld [vmem:[%s1846_s7 + $0x78] sm:$0xff]  ;;  %v244_v22 = vld [vmem:[%s1846_s7 + $0x80] sm:$0xff]  ;;  %v245_v23 = vld [vmem:[%s1846_s7 + $0x88] sm:$0xff] }
  0x16   : > { %1440 = vmatmul.mubr.msk.f32.gmra.mrb[2].mxu0 %vm271_vm0, %v231_v9  ;;  %v246_v24 = vld [vmem:[%s1846_s7 + $0x90] sm:$0xff]  ;;  %v247_v25 = vld [vmem:[%s1846_s7 + $0x98] sm:$0xff]  ;;  %v248_v26 = vld [vmem:[%s1846_s7 + $0xa0] sm:$0xff]  ;;  %1579 = vmatpush3.bf16.msra.mxu1 %v1568_v49 }
  0x17   : > { %1442 = vmatprep.mubr.msk.f32.mxu0 %vm271_vm0, %v232_v10  ;;  %v249_v27 = vld [vmem:[%s1846_s7 + $0xa8] sm:$0xff]  ;;  %v250_v28 = vld [vmem:[%s1846_s7 + $0xb0] sm:$0xff]  ;;  %v251_v29 = vld [vmem:[%s1846_s7 + $0xb8] sm:$0xff]  ;;  %1563 = vmatpush3.bf16.msra.mxu0 %v1560_v43 }
  0x18   : > { %v252_v30 = vld [vmem:[%s1846_s7 + $0xc0] sm:$0xff]  ;;  %v253_v31 = vld [vmem:[%s1846_s7 + $0xc8] sm:$0xff]  ;;  %v254_v32 = vld [vmem:[%s1846_s7 + $0xd0] sm:$0xff]  ;;  %1565 = vmatprep.subr.bf16.mxu0 %v1564_v46 }
  0x19   : > { %v255_v33 = vld [vmem:[%s1846_s7 + $0xd8] sm:$0xff]  ;;  %v256_v34 = vld [vmem:[%s1846_s7 + $0xe0] sm:$0xff]  ;;  %v257_v35 = vld [vmem:[%s1846_s7 + $0xe8] sm:$0xff] }
  0x1a   : > { %1443 = vmatmul.mubr.msk.f32.gmra.mrb[4].mxu0 %vm271_vm0, %v233_v11  ;;  %v258_v36 = vld [vmem:[%s1846_s7 + $0xf0] sm:$0xff]  ;;  %v259_v37 = vld [vmem:[%s1846_s7 + $0xf8] sm:$0xff] }
  0x1b   : > { %1445 = vmatprep.mubr.msk.f32.mxu0 %vm271_vm0, %v234_v12  ;;  %1567 = vmatpush3.bf16.msra.mxu0 %v1564_v46 }
  0x1c   : > { %1569 = vmatprep.subr.bf16.mxu0 %v1568_v49 }
  0x1e   : > { %1446 = vmatmul.mubr.msk.f32.gmra.mrb[6].mxu0 %vm271_vm0, %v235_v13 }
  0x1f   : > { %1448 = vmatprep.mubr.msk.f32.mxu0 %vm271_vm0, %v236_v14  ;;  %1571 = vmatpush3.bf16.msra.mxu0 %v1568_v49 }
  0x22   : > { %1449 = vmatmul.mubr.msk.f32.gmra.mrb[8].mxu0 %vm271_vm0, %v237_v15 }
  0x23   : > { %1451 = vmatprep.mubr.msk.f32.mxu0 %vm271_vm0, %v238_v16 }
  0x26   : > { %1452 = vmatmul.mubr.msk.f32.gmra.mrb[10].mxu0 %vm271_vm0, %v239_v17 }
  0x27   : > { %1454 = vmatprep.mubr.msk.f32.mxu0 %vm271_vm0, %v240_v18 }
  0x2a   : > { %1455 = vmatmul.mubr.msk.f32.gmra.mrb[12].mxu0 %vm271_vm0, %v241_v19 }
  0x2b   : > { %1457 = vmatprep.mubr.msk.f32.mxu0 %vm271_vm0, %v242_v20 }
  0x2e   : > { %1458 = vmatmul.mubr.msk.f32.gmra.mrb[14].mxu0 %vm271_vm0, %v243_v21 }
  0x2f   : > { %1460 = vmatprep.mubr.msk.f32.mxu0 %vm271_vm0, %v244_v22 }
  0x32   : > { %1461 = vmatmul.mubr.msk.f32.gmra.mrb[16].mxu0 %vm271_vm0, %v245_v23 }
  0x33   : > { %1463 = vmatprep.mubr.msk.f32.mxu0 %vm271_vm0, %v246_v24 }
  0x36   : > { %1464 = vmatmul.mubr.msk.f32.gmra.mrb[18].mxu0 %vm271_vm0, %v247_v25 }
  0x37   : > { %1466 = vmatprep.mubr.msk.f32.mxu0 %vm271_vm0, %v248_v26 }
  0x3a   : > { %1467 = vmatmul.mubr.msk.f32.gmra.mrb[20].mxu0 %vm271_vm0, %v249_v27 }
  0x3b   : > { %1469 = vmatprep.mubr.msk.f32.mxu0 %vm271_vm0, %v250_v28 }
  0x3e   : > { %1470 = vmatmul.mubr.msk.f32.gmra.mrb[22].mxu0 %vm271_vm0, %v251_v29 }
  0x3f   : > { %1472 = vmatprep.mubr.msk.f32.mxu0 %vm271_vm0, %v252_v30 }
  0x42   : > { %1473 = vmatmul.mubr.msk.f32.gmra.mrb[24].mxu0 %vm271_vm0, %v253_v31 }
  0x43   : > { %1475 = vmatprep.mubr.msk.f32.mxu0 %vm271_vm0, %v254_v32 }
  0x46   : > { %1476 = vmatmul.mubr.msk.f32.gmra.mrb[26].mxu0 %vm271_vm0, %v255_v33 }
  0x47   : > { %1478 = vmatprep.mubr.msk.f32.mxu0 %vm271_vm0, %v256_v34 }
  0x4a   : > { %1479 = vmatmul.mubr.msk.f32.gmra.mrb[28].mxu0 %vm271_vm0, %v257_v35 }
  0x4b   : > { %1481 = vmatprep.mubr.msk.f32.mxu0 %vm271_vm0, %v258_v36 }
  0x4e   : > { %1482 = vmatmul.mubr.msk.f32.gmra.mrb[30].mxu0 %vm271_vm0, %v259_v37 }
  0xe5   : > { %v1438_v51 = vpop.f32.mrb[0].mxu0 }
  0xe6   : > { %v440_v52 = vadd.f32 %v1438_v51, %v1939_v50  ;;  %v434_v53 = vpop.f32.mrb[1].mxu0 }
  0xe7   : > { %v435_v54 = vadd.f32 %v1939_v50, %v434_v53 }
  0xe9   : > { %1588 = vtanh.f32 %v435_v54  ;;  %v1441_v55 = vpop.f32.mrb[2].mxu0 }
  0xea   : > { %1590 = vtanh.f32 %v440_v52  ;;  %v450_v56 = vadd.f32 %v1441_v55, %v1939_v50  ;;  %v444_v57 = vpop.f32.mrb[3].mxu0 }
  0xeb   : > { %v445_v58 = vadd.f32 %v1939_v50, %v444_v57 }
  0xed   : > { %1592 = vtanh.f32 %v445_v58  ;;  %v1444_v59 = vpop.f32.mrb[4].mxu0 }
  0xee   : > { %1594 = vtanh.f32 %v450_v56  ;;  %v460_v60 = vadd.f32 %v1444_v59, %v1939_v50  ;;  %v454_v61 = vpop.f32.mrb[5].mxu0 }
  0xef   : > { %v455_v62 = vadd.f32 %v1939_v50, %v454_v61 }
  0xf1   : > { %1596 = vtanh.f32 %v455_v62  ;;  %v1447_v63 = vpop.f32.mrb[6].mxu0 }
  0xf2   : > { %1598 = vtanh.f32 %v460_v60  ;;  %v470_v0 = vadd.f32 %v1447_v63, %v1939_v50  ;;  %v464_v1 = vpop.f32.mrb[7].mxu0 }
  0xf3   : > { %v1589_v2 = vpop.eup %1588  ;;  %v465_v3 = vadd.f32 %v1939_v50, %v464_v1 }
  0xf4   : > { %v1591_v4 = vpop.eup %1590  ;;  %1500 = vmatprep.mubr.msk.f32.mxu0 %vm640_vm1, %v1589_v2 }
  0xf5   : > { %1600 = vtanh.f32 %v465_v3  ;;  %v1450_v5 = vpop.f32.mrb[8].mxu0  ;;  %1501 = vmatmul.mubr.msk.f32.vlgmr.msra.gmra.mrb[32].mxu0 %vm640_vm1, %v1591_v4 }
  0xf6   : > { %1602 = vtanh.f32 %v470_v0  ;;  %v480_v6 = vadd.f32 %v1450_v5, %v1939_v50  ;;  %v474_v7 = vpop.f32.mrb[9].mxu0 }
  0xf7   : > { %v1593_v8 = vpop.eup %1592  ;;  %v475_v9 = vadd.f32 %v1939_v50, %v474_v7 }
  0xf8   : > { %v1595_v10 = vpop.eup %1594  ;;  %1503 = vmatprep.mubr.msk.f32.mxu1 %vm640_vm1, %v1593_v8 }
  0xf9   : > { %1604 = vtanh.f32 %v475_v9  ;;  %v1453_v11 = vpop.f32.mrb[10].mxu0  ;;  %1504 = vmatmul.mubr.msk.f32.vlgmr.msra.gmra.mrb[0].mxu1 %vm640_vm1, %v1595_v10 }
  0xfa   : > { %1606 = vtanh.f32 %v480_v6  ;;  %v490_v12 = vadd.f32 %v1453_v11, %v1939_v50  ;;  %v484_v13 = vpop.f32.mrb[11].mxu0 }
  0xfb   : > { %v1597_v14 = vpop.eup %1596  ;;  %v485_v15 = vadd.f32 %v1939_v50, %v484_v13 }
  0xfc   : > { %v1599_v16 = vpop.eup %1598  ;;  %1506 = vmatprep.mubr.msk.f32.mxu1 %vm640_vm1, %v1597_v14 }
  0xfd   : > { %1608 = vtanh.f32 %v485_v15  ;;  %v1456_v17 = vpop.f32.mrb[12].mxu0  ;;  %1507 = vmatmul.mubr.msk.f32.gmra.mrb[2].mxu1 %vm640_vm1, %v1599_v16 }
  0xfe   : > { %1610 = vtanh.f32 %v490_v12  ;;  %v500_v18 = vadd.f32 %v1456_v17, %v1939_v50  ;;  %v494_v19 = vpop.f32.mrb[13].mxu0 }
  0xff   : > { %v1601_v20 = vpop.eup %1600  ;;  %v495_v21 = vadd.f32 %v1939_v50, %v494_v19  ;;  %v2008_v19 = vld [vmem:[%s2120_s4] ss:$0 sm:$0xff] }
 0x100   : > { %v1603_v22 = vpop.eup %1602  ;;  %1509 = vmatprep.mubr.msk.f32.mxu1 %vm640_vm1, %v1601_v20 }
 0x101   : > { %1612 = vtanh.f32 %v495_v21  ;;  %v1459_v23 = vpop.f32.mrb[14].mxu0  ;;  %1510 = vmatmul.mubr.msk.f32.gmra.mrb[4].mxu1 %vm640_vm1, %v1603_v22 }
 0x102   : > { %1614 = vtanh.f32 %v500_v18  ;;  %v510_v24 = vadd.f32 %v1459_v23, %v1939_v50  ;;  %v504_v25 = vpop.f32.mrb[15].mxu0 }
 0x103   : > { %v1605_v26 = vpop.eup %1604  ;;  %v505_v27 = vadd.f32 %v1939_v50, %v504_v25 }
 0x104   : > { %v1607_v28 = vpop.eup %1606  ;;  %1512 = vmatprep.mubr.msk.f32.mxu1 %vm640_vm1, %v1605_v26 }
 0x105   : > { %1616 = vtanh.f32 %v505_v27  ;;  %v1462_v29 = vpop.f32.mrb[16].mxu0  ;;  %1513 = vmatmul.mubr.msk.f32.gmra.mrb[6].mxu1 %vm640_vm1, %v1607_v28 }
 0x106   : > { %1618 = vtanh.f32 %v510_v24  ;;  %v520_v30 = vadd.f32 %v1462_v29, %v1939_v50  ;;  %v514_v31 = vpop.f32.mrb[17].mxu0 }
 0x107   : > { %v1609_v32 = vpop.eup %1608  ;;  %v515_v33 = vadd.f32 %v1939_v50, %v514_v31 }
 0x108   : > { %v1611_v34 = vpop.eup %1610  ;;  %1515 = vmatprep.mubr.msk.f32.mxu1 %vm640_vm1, %v1609_v32 }
 0x109   : > { %1620 = vtanh.f32 %v515_v33  ;;  %v1465_v35 = vpop.f32.mrb[18].mxu0  ;;  %1516 = vmatmul.mubr.msk.f32.gmra.mrb[8].mxu1 %vm640_vm1, %v1611_v34 }
 0x10a   : > { %1622 = vtanh.f32 %v520_v30  ;;  %v530_v36 = vadd.f32 %v1465_v35, %v1939_v50  ;;  %v524_v37 = vpop.f32.mrb[19].mxu0 }
 0x10b   : > { %v1613_v38 = vpop.eup %1612  ;;  %v525_v39 = vadd.f32 %v1939_v50, %v524_v37 }
 0x10c   : > { %v1615_v40 = vpop.eup %1614  ;;  %1518 = vmatprep.mubr.msk.f32.mxu1 %vm640_vm1, %v1613_v38 }
 0x10d   : > { %1624 = vtanh.f32 %v525_v39  ;;  %v1468_v41 = vpop.f32.mrb[20].mxu0  ;;  %1519 = vmatmul.mubr.msk.f32.gmra.mrb[10].mxu1 %vm640_vm1, %v1615_v40 }
 0x10e   : > { %1626 = vtanh.f32 %v530_v36  ;;  %v540_v42 = vadd.f32 %v1468_v41, %v1939_v50  ;;  %v534_v43 = vpop.f32.mrb[21].mxu0 }
 0x10f   : > { %v1617_v44 = vpop.eup %1616  ;;  %v535_v45 = vadd.f32 %v1939_v50, %v534_v43 }
 0x110   : > { %v1619_v46 = vpop.eup %1618  ;;  %1521 = vmatprep.mubr.msk.f32.mxu1 %vm640_vm1, %v1617_v44 }
 0x111   : > { %1628 = vtanh.f32 %v535_v45  ;;  %v1471_v47 = vpop.f32.mrb[22].mxu0  ;;  %1522 = vmatmul.mubr.msk.f32.gmra.mrb[12].mxu1 %vm640_vm1, %v1619_v46 }
 0x112   : > { %1630 = vtanh.f32 %v540_v42  ;;  %v550_v48 = vadd.f32 %v1471_v47, %v1939_v50  ;;  %v544_v49 = vpop.f32.mrb[23].mxu0 }
 0x113   : > { %v1621_v51 = vpop.eup %1620  ;;  %v545_v52 = vadd.f32 %v1939_v50, %v544_v49 }
 0x114   : > { %v1623_v53 = vpop.eup %1622  ;;  %1524 = vmatprep.mubr.msk.f32.mxu1 %vm640_vm1, %v1621_v51 }
 0x115   : > { %1632 = vtanh.f32 %v545_v52  ;;  %v1474_v54 = vpop.f32.mrb[24].mxu0  ;;  %1525 = vmatmul.mubr.msk.f32.gmra.mrb[14].mxu1 %vm640_vm1, %v1623_v53 }
 0x116   : > { %1634 = vtanh.f32 %v550_v48  ;;  %v560_v55 = vadd.f32 %v1474_v54, %v1939_v50  ;;  %v554_v56 = vpop.f32.mrb[25].mxu0 }
 0x117   : > { %v1625_v57 = vpop.eup %1624  ;;  %v555_v58 = vadd.f32 %v1939_v50, %v554_v56 }
 0x118   : > { %v1627_v59 = vpop.eup %1626  ;;  %1527 = vmatprep.mubr.msk.f32.mxu1 %vm640_vm1, %v1625_v57 }
 0x119   : > { %1636 = vtanh.f32 %v555_v58  ;;  %v1477_v60 = vpop.f32.mrb[26].mxu0  ;;  %1528 = vmatmul.mubr.msk.f32.gmra.mrb[16].mxu1 %vm640_vm1, %v1627_v59 }
 0x11a   : > { %1638 = vtanh.f32 %v560_v55  ;;  %v570_v61 = vadd.f32 %v1477_v60, %v1939_v50  ;;  %v564_v62 = vpop.f32.mrb[27].mxu0 }
 0x11b   : > { %v1629_v63 = vpop.eup %1628  ;;  %v565_v0 = vadd.f32 %v1939_v50, %v564_v62 }
 0x11c   : > { %v1631_v1 = vpop.eup %1630  ;;  %1530 = vmatprep.mubr.msk.f32.mxu1 %vm640_vm1, %v1629_v63 }
 0x11d   : > { %1640 = vtanh.f32 %v565_v0  ;;  %v1480_v2 = vpop.f32.mrb[28].mxu0  ;;  %1531 = vmatmul.mubr.msk.f32.gmra.mrb[18].mxu1 %vm640_vm1, %v1631_v1 }
 0x11e   : > { %1642 = vtanh.f32 %v570_v61  ;;  %v580_v3 = vadd.f32 %v1480_v2, %v1939_v50  ;;  %v574_v4 = vpop.f32.mrb[29].mxu0 }
 0x11f   : > { %v1633_v5 = vpop.eup %1632  ;;  %v575_v6 = vadd.f32 %v1939_v50, %v574_v4 }
 0x120   : > { %v1635_v7 = vpop.eup %1634  ;;  %1533 = vmatprep.mubr.msk.f32.mxu1 %vm640_vm1, %v1633_v5 }
 0x121   : > { %1644 = vtanh.f32 %v575_v6  ;;  %v1483_v8 = vpop.f32.mrb[30].mxu0  ;;  %1534 = vmatmul.mubr.msk.f32.gmra.mrb[20].mxu1 %vm640_vm1, %v1635_v7 }
 0x122   : > { %1646 = vtanh.f32 %v580_v3  ;;  %v590_v9 = vadd.f32 %v1483_v8, %v1939_v50  ;;  %v584_v10 = vpop.f32.mrb[31].mxu0 }
 0x123   : > { %v1637_v11 = vpop.eup %1636  ;;  %v585_v12 = vadd.f32 %v1939_v50, %v584_v10 }
 0x124   : > { %v1639_v13 = vpop.eup %1638  ;;  %1536 = vmatprep.mubr.msk.f32.mxu1 %vm640_vm1, %v1637_v11 }
 0x125   : > { %1648 = vtanh.f32 %v585_v12  ;;  %1537 = vmatmul.mubr.msk.f32.gmra.mrb[22].mxu1 %vm640_vm1, %v1639_v13 }
 0x126   : > { %1650 = vtanh.f32 %v590_v9 }
 0x127   : > { %v1641_v14 = vpop.eup %1640 }
 0x128   : > { %v1643_v15 = vpop.eup %1642  ;;  %1539 = vmatprep.mubr.msk.f32.mxu1 %vm640_vm1, %v1641_v14 }
 0x129   : > { %1540 = vmatmul.mubr.msk.f32.gmra.mrb[24].mxu1 %vm640_vm1, %v1643_v15 }
 0x12b   : > { %v1645_v16 = vpop.eup %1644 }
 0x12c   : > { %v1647_v17 = vpop.eup %1646  ;;  %1542 = vmatprep.mubr.msk.f32.mxu1 %vm640_vm1, %v1645_v16 }
 0x12d   : > { %1543 = vmatmul.mubr.msk.f32.gmra.mrb[26].mxu1 %vm640_vm1, %v1647_v17 }
 0x12f   : > { %v1649_v50 = vpop.eup %1648 }
 0x130   : > { %v1651_v18 = vpop.eup %1650  ;;  %1545 = vmatprep.mubr.msk.f32.mxu1 %vm640_vm1, %v1649_v50 }
 0x131   : > { %1546 = vmatmul.mubr.msk.f32.gmra.mrb[28].mxu1 %vm640_vm1, %v1651_v18 }
 0x1c8   : > { %v1502_v20 = vpop.f32.mrb[32].mxu0 }
 0x1c9   : > { %v809_v21 = vadd.f32 %v1502_v20, %v2008_v19  ;;  %v803_v22 = vpop.f32.mrb[33].mxu0 }
 0x1ca   : > { %v804_v23 = vadd.f32 %v2008_v19, %v803_v22 }
 0x1cb   : > { %v1319_v24 = vmul.f32 -1.442695, %v809_v21 }
 0x1cc   : > { %v1318_v25 = vmul.f32 -1.442695, %v804_v23  ;;  %v1505_v26 = vpop.f32.mrb[0].mxu1 }
 0x1cd   : > { %1652 = vpow2.f32 %v1319_v24  ;;  %v819_v27 = vadd.f32 %v1505_v26, %v2008_v19  ;;  %v813_v28 = vpop.f32.mrb[1].mxu1 }
 0x1ce   : > { %1654 = vpow2.f32 %v1318_v25  ;;  %v814_v29 = vadd.f32 %v2008_v19, %v813_v28 }
 0x1cf   : > { %v1321_v30 = vmul.f32 -1.442695, %v819_v27 }
 0x1d0   : > { %v1320_v31 = vmul.f32 -1.442695, %v814_v29  ;;  %v1508_v32 = vpop.f32.mrb[2].mxu1 }
 0x1d1   : > { %1656 = vpow2.f32 %v1321_v30  ;;  %v829_v33 = vadd.f32 %v1508_v32, %v2008_v19  ;;  %v823_v34 = vpop.f32.mrb[3].mxu1 }
 0x1d2   : > { %1658 = vpow2.f32 %v1320_v31  ;;  %v824_v35 = vadd.f32 %v2008_v19, %v823_v34 }
 0x1d3   : > { %v1323_v36 = vmul.f32 -1.442695, %v829_v33 }
 0x1d4   : > { %v1322_v37 = vmul.f32 -1.442695, %v824_v35  ;;  %v1511_v38 = vpop.f32.mrb[4].mxu1 }
 0x1d5   : > { %1660 = vpow2.f32 %v1323_v36  ;;  %v839_v39 = vadd.f32 %v1511_v38, %v2008_v19  ;;  %v833_v40 = vpop.f32.mrb[5].mxu1 }
 0x1d6   : > { %1662 = vpow2.f32 %v1322_v37  ;;  %v834_v41 = vadd.f32 %v2008_v19, %v833_v40 }
 0x1d7   : > { %v1653_v42 = vpop.eup %1652  ;;  %v1325_v43 = vmul.f32 -1.442695, %v839_v39 }
 0x1d8   : > { %v1655_v44 = vpop.eup %1654  ;;  %v1059_v45 = vadd.f32 1.0, %v1653_v42  ;;  %v1324_v46 = vmul.f32 -1.442695, %v834_v41  ;;  %v1514_v47 = vpop.f32.mrb[6].mxu1 }
 0x1d9   : > { %v1058_v48 = vadd.f32 1.0, %v1655_v44  ;;  %1664 = vpow2.f32 %v1325_v43  ;;  %v849_v49 = vadd.f32 %v1514_v47, %v2008_v19  ;;  %v843_v51 = vpop.f32.mrb[7].mxu1 }
 0x1da   : > { %1666 = vrcp.f32 %v1059_v45  ;;  %v844_v52 = vadd.f32 %v2008_v19, %v843_v51 }
 0x1db   : > { %v1657_v53 = vpop.eup %1656  ;;  %1668 = vrcp.f32 %v1058_v48  ;;  %v1327_v54 = vmul.f32 -1.442695, %v849_v49 }
 0x1dc   : > { %v1659_v55 = vpop.eup %1658  ;;  %v1061_v56 = vadd.f32 1.0, %v1657_v53  ;;  %1670 = vpow2.f32 %v1324_v46  ;;  %v1326_v57 = vmul.f32 -1.442695, %v844_v52  ;;  %v1517_v58 = vpop.f32.mrb[8].mxu1 }
 0x1dd   : > { %v1060_v59 = vadd.f32 1.0, %v1659_v55  ;;  %1672 = vpow2.f32 %v1327_v54  ;;  %v859_v60 = vadd.f32 %v1517_v58, %v2008_v19  ;;  %v853_v61 = vpop.f32.mrb[9].mxu1 }
 0x1de   : > { %1674 = vrcp.f32 %v1061_v56  ;;  %v854_v62 = vadd.f32 %v2008_v19, %v853_v61 }
 0x1df   : > { %v1661_v63 = vpop.eup %1660  ;;  %1676 = vrcp.f32 %v1060_v59  ;;  %v1329_v0 = vmul.f32 -1.442695, %v859_v60 }
 0x1e0   : > { %v1663_v1 = vpop.eup %1662  ;;  %v1063_v2 = vadd.f32 1.0, %v1661_v63  ;;  %1678 = vpow2.f32 %v1326_v57  ;;  %v1328_v3 = vmul.f32 -1.442695, %v854_v62  ;;  %v1520_v4 = vpop.f32.mrb[10].mxu1 }
 0x1e1   : > { %v1062_v5 = vadd.f32 1.0, %v1663_v1  ;;  %1680 = vpow2.f32 %v1329_v0  ;;  %v869_v6 = vadd.f32 %v1520_v4, %v2008_v19  ;;  %v863_v7 = vpop.f32.mrb[11].mxu1 }
 0x1e2   : > { %1682 = vrcp.f32 %v1063_v2  ;;  %v864_v8 = vadd.f32 %v2008_v19, %v863_v7 }
 0x1e3   : > { %v1665_v9 = vpop.eup %1664  ;;  %1684 = vrcp.f32 %v1062_v5  ;;  %v1331_v10 = vmul.f32 -1.442695, %v869_v6 }
 0x1e4   : > { %v1667_v11 = vpop.eup %1666  ;;  %v1065_v12 = vadd.f32 1.0, %v1665_v9  ;;  %1686 = vpow2.f32 %v1328_v3  ;;  %v1330_v13 = vmul.f32 -1.442695, %v864_v8  ;;  %v1523_v14 = vpop.f32.mrb[12].mxu1 }
 0x1e5   : > { %v1669_v15 = vpop.eup %1668  ;;  %1156 = vst.msk [vmem:[%s2028_s8 + $0x8] sm:$0xff] %vm1154_vm2, %v1667_v11  ;;  %1688 = vpow2.f32 %v1331_v10  ;;  %v879_v16 = vadd.f32 %v1523_v14, %v2008_v19  ;;  %v873_v17 = vpop.f32.mrb[13].mxu1 }
 0x1e6   : > { %v1671_v50 = vpop.eup %1670  ;;  %1155 = vst.msk [vmem:[%s2028_s8] sm:$0xff] %vm1154_vm2, %v1669_v15  ;;  %1690 = vrcp.f32 %v1065_v12  ;;  %v874_v18 = vadd.f32 %v2008_v19, %v873_v17 }
 0x1e7   : > { %v1673_v20 = vpop.eup %1672  ;;  %v1064_v21 = vadd.f32 1.0, %v1671_v50  ;;  %1692 = vpow2.f32 %v1330_v13  ;;  %v1333_v22 = vmul.f32 -1.442695, %v879_v16 }
 0x1e8   : > { %v1675_v23 = vpop.eup %1674  ;;  %v1067_v24 = vadd.f32 1.0, %v1673_v20  ;;  %v1332_v25 = vmul.f32 -1.442695, %v874_v18  ;;  %v1526_v26 = vpop.f32.mrb[14].mxu1 }
 0x1e9   : > { %v1677_v27 = vpop.eup %1676  ;;  %1158 = vst.msk [vmem:[%s2028_s8 + $0x18] sm:$0xff] %vm1154_vm2, %v1675_v23  ;;  %1694 = vrcp.f32 %v1064_v21  ;;  %v889_v28 = vadd.f32 %v1526_v26, %v2008_v19  ;;  %v883_v29 = vpop.f32.mrb[15].mxu1 }
 0x1ea   : > { %v1679_v30 = vpop.eup %1678  ;;  %1157 = vst.msk [vmem:[%s2028_s8 + $0x10] sm:$0xff] %vm1154_vm2, %v1677_v27  ;;  %1696 = vrcp.f32 %v1067_v24  ;;  %v884_v31 = vadd.f32 %v2008_v19, %v883_v29 }
 0x1eb   : > { %v1681_v32 = vpop.eup %1680  ;;  %v1066_v33 = vadd.f32 1.0, %v1679_v30  ;;  %1698 = vpow2.f32 %v1333_v22  ;;  %v1335_v34 = vmul.f32 -1.442695, %v889_v28 }
 0x1ec   : > { %v1683_v35 = vpop.eup %1682  ;;  %v1069_v36 = vadd.f32 1.0, %v1681_v32  ;;  %1700 = vpow2.f32 %v1332_v25  ;;  %v1334_v37 = vmul.f32 -1.442695, %v884_v31  ;;  %v1529_v38 = vpop.f32.mrb[16].mxu1 }
 0x1ed   : > { %v1685_v39 = vpop.eup %1684  ;;  %1160 = vst.msk [vmem:[%s2028_s8 + $0x28] sm:$0xff] %vm1154_vm2, %v1683_v35  ;;  %1702 = vrcp.f32 %v1066_v33  ;;  %v899_v40 = vadd.f32 %v1529_v38, %v2008_v19  ;;  %v893_v41 = vpop.f32.mrb[17].mxu1 }
 0x1ee   : > { %v1687_v42 = vpop.eup %1686  ;;  %1159 = vst.msk [vmem:[%s2028_s8 + $0x20] sm:$0xff] %vm1154_vm2, %v1685_v39  ;;  %1704 = vrcp.f32 %v1069_v36  ;;  %v894_v43 = vadd.f32 %v2008_v19, %v893_v41 }
 0x1ef   : > { %v1689_v44 = vpop.eup %1688  ;;  %v1068_v45 = vadd.f32 1.0, %v1687_v42  ;;  %1706 = vpow2.f32 %v1335_v34  ;;  %v1337_v46 = vmul.f32 -1.442695, %v899_v40 }
 0x1f0   : > { %v1691_v47 = vpop.eup %1690  ;;  %v1071_v48 = vadd.f32 1.0, %v1689_v44  ;;  %1708 = vpow2.f32 %v1334_v37  ;;  %v1532_v49 = vpop.f32.mrb[18].mxu1  ;;  %v1336_v52 = vmul.f32 -1.442695, %v894_v43 }
 0x1f1   : > { %v1693_v51 = vpop.eup %1692  ;;  %1162 = vst.msk [vmem:[%s2028_s8 + $0x38] sm:$0xff] %vm1154_vm2, %v1691_v47  ;;  %1710 = vrcp.f32 %v1068_v45  ;;  %v909_v53 = vadd.f32 %v1532_v49, %v2008_v19  ;;  %v903_v54 = vpop.f32.mrb[19].mxu1 }
 0x1f2   : > { %1712 = vrcp.f32 %v1071_v48  ;;  %v1070_v55 = vadd.f32 1.0, %v1693_v51  ;;  %v904_v56 = vadd.f32 %v2008_v19, %v903_v54 }
 0x1f3   : > { %v1695_v57 = vpop.eup %1694  ;;  %1714 = vpow2.f32 %v1337_v46  ;;  %v1339_v58 = vmul.f32 -1.442695, %v909_v53 }
 0x1f4   : > { %v1697_v59 = vpop.eup %1696  ;;  %1161 = vst.msk [vmem:[%s2028_s8 + $0x30] sm:$0xff] %vm1154_vm2, %v1695_v57  ;;  %1716 = vrcp.f32 %v1070_v55  ;;  %v1338_v60 = vmul.f32 -1.442695, %v904_v56  ;;  %v1535_v61 = vpop.f32.mrb[20].mxu1 }
 0x1f5   : > { %v1699_v62 = vpop.eup %1698  ;;  %1164 = vst.msk [vmem:[%s2028_s8 + $0x48] sm:$0xff] %vm1154_vm2, %v1697_v59  ;;  %1718 = vpow2.f32 %v1336_v52  ;;  %v919_v63 = vadd.f32 %v1535_v61, %v2008_v19  ;;  %v913_v0 = vpop.f32.mrb[21].mxu1 }
 0x1f6   : > { %v1701_v1 = vpop.eup %1700  ;;  %v1073_v2 = vadd.f32 1.0, %v1699_v62  ;;  %1720 = vpow2.f32 %v1339_v58  ;;  %v914_v3 = vadd.f32 %v2008_v19, %v913_v0 }
 0x1f7   : > { %v1703_v4 = vpop.eup %1702  ;;  %v1072_v5 = vadd.f32 1.0, %v1701_v1  ;;  %1722 = vpow2.f32 %v1338_v60  ;;  %v1341_v6 = vmul.f32 -1.442695, %v919_v63 }
 0x1f8   : > { %v1705_v7 = vpop.eup %1704  ;;  %1163 = vst.msk [vmem:[%s2028_s8 + $0x40] sm:$0xff] %vm1154_vm2, %v1703_v4  ;;  %1724 = vrcp.f32 %v1073_v2  ;;  %v1340_v8 = vmul.f32 -1.442695, %v914_v3  ;;  %v1538_v9 = vpop.f32.mrb[22].mxu1 }
 0x1f9   : > { %v1707_v10 = vpop.eup %1706  ;;  %1166 = vst.msk [vmem:[%s2028_s8 + $0x58] sm:$0xff] %vm1154_vm2, %v1705_v7  ;;  %1726 = vrcp.f32 %v1072_v5  ;;  %v929_v11 = vadd.f32 %v1538_v9, %v2008_v19  ;;  %v923_v12 = vpop.f32.mrb[23].mxu1 }
 0x1fa   : > { %v1709_v13 = vpop.eup %1708  ;;  %v1075_v14 = vadd.f32 1.0, %v1707_v10  ;;  %1728 = vpow2.f32 %v1341_v6  ;;  %v924_v15 = vadd.f32 %v2008_v19, %v923_v12 }
 0x1fb   : > { %v1711_v16 = vpop.eup %1710  ;;  %v1074_v17 = vadd.f32 1.0, %v1709_v13  ;;  %1730 = vpow2.f32 %v1340_v8  ;;  %v1343_v50 = vmul.f32 -1.442695, %v929_v11 }
 0x1fc   : > { %v1713_v18 = vpop.eup %1712  ;;  %1165 = vst.msk [vmem:[%s2028_s8 + $0x50] sm:$0xff] %vm1154_vm2, %v1711_v16  ;;  %1732 = vrcp.f32 %v1075_v14  ;;  %v1342_v20 = vmul.f32 -1.442695, %v924_v15  ;;  %v1541_v21 = vpop.f32.mrb[24].mxu1 }
 0x1fd   : > { %v1715_v22 = vpop.eup %1714  ;;  %1168 = vst.msk [vmem:[%s2028_s8 + $0x68] sm:$0xff] %vm1154_vm2, %v1713_v18  ;;  %1734 = vrcp.f32 %v1074_v17  ;;  %v939_v23 = vadd.f32 %v1541_v21, %v2008_v19  ;;  %v933_v24 = vpop.f32.mrb[25].mxu1 }
 0x1fe   : > { %v1717_v25 = vpop.eup %1716  ;;  %v1077_v26 = vadd.f32 1.0, %v1715_v22  ;;  %1736 = vpow2.f32 %v1343_v50  ;;  %v934_v27 = vadd.f32 %v2008_v19, %v933_v24 }
 0x1ff   : > { %v1719_v28 = vpop.eup %1718  ;;  %1167 = vst.msk [vmem:[%s2028_s8 + $0x60] sm:$0xff] %vm1154_vm2, %v1717_v25  ;;  %1738 = vpow2.f32 %v1342_v20  ;;  %v1345_v29 = vmul.f32 -1.442695, %v939_v23 }
 0x200   : > { %v1721_v30 = vpop.eup %1720  ;;  %1740 = vrcp.f32 %v1077_v26  ;;  %v1076_v31 = vadd.f32 1.0, %v1719_v28  ;;  %v1544_v32 = vpop.f32.mrb[26].mxu1  ;;  %v1344_v35 = vmul.f32 -1.442695, %v934_v27 }
 0x201   : > { %v1723_v33 = vpop.eup %1722  ;;  %v1079_v34 = vadd.f32 1.0, %v1721_v30  ;;  %1742 = vpow2.f32 %v1345_v29  ;;  %v949_v36 = vadd.f32 %v1544_v32, %v2008_v19  ;;  %v943_v37 = vpop.f32.mrb[27].mxu1 }
 0x202   : > { %v1725_v38 = vpop.eup %1724  ;;  %1744 = vrcp.f32 %v1076_v31  ;;  %v1078_v39 = vadd.f32 1.0, %v1723_v33  ;;  %v944_v40 = vadd.f32 %v2008_v19, %v943_v37 }
 0x203   : > { %v1727_v41 = vpop.eup %1726  ;;  %1170 = vst.msk [vmem:[%s2028_s8 + $0x78] sm:$0xff] %vm1154_vm2, %v1725_v38  ;;  %1746 = vrcp.f32 %v1079_v34  ;;  %v1347_v42 = vmul.f32 -1.442695, %v949_v36 }
 0x204   : > { %v1729_v43 = vpop.eup %1728  ;;  %1169 = vst.msk [vmem:[%s2028_s8 + $0x70] sm:$0xff] %vm1154_vm2, %v1727_v41  ;;  %1748 = vrcp.f32 %v1078_v39  ;;  %v1547_v44 = vpop.f32.mrb[28].mxu1  ;;  %v1346_v47 = vmul.f32 -1.442695, %v944_v40 }
 0x205   : > { %v1731_v45 = vpop.eup %1730  ;;  %v1081_v46 = vadd.f32 1.0, %v1729_v43  ;;  %1750 = vpow2.f32 %v1344_v35  ;;  %v959_v48 = vadd.f32 %v1547_v44, %v2008_v19  ;;  %v953_v49 = vpop.f32.mrb[29].mxu1 }
 0x206   : > { %v1733_v51 = vpop.eup %1732  ;;  %v1080_v52 = vadd.f32 1.0, %v1731_v45  ;;  %1752 = vpow2.f32 %v1347_v42  ;;  %v954_v53 = vadd.f32 %v2008_v19, %v953_v49 }
 0x207   : > { %v1735_v54 = vpop.eup %1734  ;;  %1172 = vst.msk [vmem:[%s2028_s8 + $0x88] sm:$0xff] %vm1154_vm2, %v1733_v51  ;;  %1754 = vrcp.f32 %v1081_v46  ;;  %v1349_v55 = vmul.f32 -1.442695, %v959_v48 }
 0x208   : > { %v1737_v56 = vpop.eup %1736  ;;  %1171 = vst.msk [vmem:[%s2028_s8 + $0x80] sm:$0xff] %vm1154_vm2, %v1735_v54  ;;  %1756 = vrcp.f32 %v1080_v52  ;;  %v1348_v59 = vmul.f32 -1.442695, %v954_v53 }
 0x209   : > { %v1739_v57 = vpop.eup %1738  ;;  %v1083_v58 = vadd.f32 1.0, %v1737_v56  ;;  %1758 = vpow2.f32 %v1346_v47 }
 0x20a   : > { %v1741_v60 = vpop.eup %1740  ;;  %v1082_v61 = vadd.f32 1.0, %v1739_v57  ;;  %1760 = vpow2.f32 %v1349_v55 }
 0x20b   : > { %v1743_v19 = vpop.eup %1742  ;;  %1174 = vst.msk [vmem:[%s2028_s8 + $0x98] sm:$0xff] %vm1154_vm2, %v1741_v60  ;;  %1762 = vrcp.f32 %v1083_v58 }
 0x20c   : > { %v1745_v62 = vpop.eup %1744  ;;  %1764 = vrcp.f32 %v1082_v61  ;;  %v1085_v63 = vadd.f32 1.0, %v1743_v19 }
 0x20d   : > { %v1747_v0 = vpop.eup %1746  ;;  %1173 = vst.msk [vmem:[%s2028_s8 + $0x90] sm:$0xff] %vm1154_vm2, %v1745_v62  ;;  %1766 = vpow2.f32 %v1348_v59 }
 0x20e   : > { %v1749_v1 = vpop.eup %1748  ;;  %1176 = vst.msk [vmem:[%s2028_s8 + $0xa8] sm:$0xff] %vm1154_vm2, %v1747_v0  ;;  %1768 = vrcp.f32 %v1085_v63 }
 0x20f   : > { %v1751_v2 = vpop.eup %1750  ;;  %1175 = vst.msk [vmem:[%s2028_s8 + $0xa0] sm:$0xff] %vm1154_vm2, %v1749_v1 }
 0x210   : > { %v1753_v3 = vpop.eup %1752  ;;  %v1084_v4 = vadd.f32 1.0, %v1751_v2 }
 0x211   : > { %v1755_v5 = vpop.eup %1754  ;;  %v1087_v6 = vadd.f32 1.0, %v1753_v3 }
 0x212   : > { %v1757_v7 = vpop.eup %1756  ;;  %1178 = vst.msk [vmem:[%s2028_s8 + $0xb8] sm:$0xff] %vm1154_vm2, %v1755_v5  ;;  %1770 = vrcp.f32 %v1084_v4 }
 0x213   : > { %v1759_v8 = vpop.eup %1758  ;;  %1177 = vst.msk [vmem:[%s2028_s8 + $0xb0] sm:$0xff] %vm1154_vm2, %v1757_v7  ;;  %1772 = vrcp.f32 %v1087_v6 }
 0x214   : > { %v1761_v9 = vpop.eup %1760  ;;  %v1086_v10 = vadd.f32 1.0, %v1759_v8 }
 0x215   : > { %v1763_v11 = vpop.eup %1762  ;;  %v1089_v12 = vadd.f32 1.0, %v1761_v9 }
 0x216   : > { %v1765_v13 = vpop.eup %1764  ;;  %1180 = vst.msk [vmem:[%s2028_s8 + $0xc8] sm:$0xff] %vm1154_vm2, %v1763_v11  ;;  %1774 = vrcp.f32 %v1086_v10 }
 0x217   : > { %v1767_v14 = vpop.eup %1766  ;;  %1179 = vst.msk [vmem:[%s2028_s8 + $0xc0] sm:$0xff] %vm1154_vm2, %v1765_v13  ;;  %1776 = vrcp.f32 %v1089_v12 }
 0x218   : > { %v1769_v15 = vpop.eup %1768  ;;  %v1088_v16 = vadd.f32 1.0, %v1767_v14 }
 0x219   : > { %1182 = vst.msk [vmem:[%s2028_s8 + $0xd8] sm:$0xff] %vm1154_vm2, %v1769_v15 }
 0x21a   : > { %1778 = vrcp.f32 %v1088_v16 }
 0x21c   : > { %v1771_v17 = vpop.eup %1770 }
 0x21d   : > { %v1773_v50 = vpop.eup %1772  ;;  %1181 = vst.msk [vmem:[%s2028_s8 + $0xd0] sm:$0xff] %vm1154_vm2, %v1771_v17 }
 0x21e   : > { %1184 = vst.msk [vmem:[%s2028_s8 + $0xe8] sm:$0xff] %vm1154_vm2, %v1773_v50 }
 0x220   : > { %v1775_v18 = vpop.eup %1774 }
 0x221   : > { %v1777_v20 = vpop.eup %1776  ;;  %1183 = vst.msk [vmem:[%s2028_s8 + $0xe0] sm:$0xff] %vm1154_vm2, %v1775_v18 }
 0x222   : > { %1186 = vst.msk [vmem:[%s2028_s8 + $0xf8] sm:$0xff] %vm1154_vm2, %v1777_v20 }
 0x224   : > { %v1779_v21 = vpop.eup %1778 }
 0x225   : > { %1185 = vst.msk [vmem:[%s2028_s8 + $0xf0] sm:$0xff] %vm1154_vm2, %v1779_v21 }
 0x226 PF: > { %s15_s18 = sadd.s32 1, %s1786_s18  }
 0x227   : > { %p12_p4 = scmp.ge.s32.totalorder %s15_s18, 4  }
 0x229   :  { %14 = sbr.rel (!%p12_p4) target bundleno = 1 (0x1), region = 70 }

</bundles_post_ra>
